<compile_context>
chip_gen: v6e
topology: v6e:2x2x1
jax: 0.10.0
libtpu: 0.0.40
codegen_flags: <defaults>
</compile_context>

<pallas_src>
import functools

import jax
import jax.numpy as jnp
from jax.experimental import pallas as pl
from jax.experimental.pallas import tpu as pltpu


def _make_kernel(Bt, C, use_vpu):
    def kernel(x_ref, w_ref, cv_ref, cx_ref, cy_ref, hm_ref):
        # x_ref:  (Bt, C, HW)   input features (fcn output), flattened spatial
        # w_ref:  (C, L, 1) if use_vpu else (L, C)   hm_conv weights (no bias)
        # cv_ref: (2, HW)       row 0 = normalized x coords, row 1 = y coords
        # cx_ref: (Bt, L, 1)    expected x coord in (-1, 1)
        # cy_ref: (Bt, L, 1)    expected y coord in (-1, 1)
        # hm_ref: (Bt, L, HW)   flat-softmax heatmaps
        xs = cv_ref[0:1, :]                                   # [1, HW]
        ys = cv_ref[1:2, :]                                   # [1, HW]

        for b in range(Bt):
            if use_vpu:
                # Small C: C unrolled VPU FMAs. Each weight column is a
                # lane-width-1 [L, 1] value broadcast across the HW lanes;
                # this never touches the MXU.
                u = w_ref[0] * x_ref[b, 0:1, :]               # [L, HW]
                for c in range(1, C):
                    u = u + w_ref[c] * x_ref[b, c:c + 1, :]
                u = u.astype(jnp.float32)
            else:
                # Backbone-sized C: clean 2D MXU matmul [L,C] x [C,HW].
                u = jnp.dot(w_ref[...], x_ref[b],
                            preferred_element_type=jnp.float32)  # [L, HW]

            # flat_softmax over the flattened spatial (lane) axis.
            m = jnp.max(u, axis=-1, keepdims=True)            # [L, 1]
            p = jnp.exp(u - m)                                # [L, HW]
            s = jnp.sum(p, axis=-1, keepdims=True)            # [L, 1]
            inv_s = pl.reciprocal(s, approx=False)            # EUP, exact

            # dsnt: expected coords = sum(hm * coord) -> VPU mul + XLU lane
            # reductions on un-normalized p, normalized once.
            cx = jnp.sum(p * xs, axis=-1, keepdims=True)      # [L, 1]
            cy = jnp.sum(p * ys, axis=-1, keepdims=True)      # [L, 1]

            hm_ref[b] = (p * inv_s).astype(hm_ref.dtype)
            cx_ref[b] = (cx * inv_s).astype(cx_ref.dtype)
            cy_ref[b] = (cy * inv_s).astype(cy_ref.dtype)

    return kernel


def _normalized_coord_table(H, W):
    # dsntnn.normalized_linspace: value_i = (2*i + 1)/n - 1
    ys = (2.0 * jnp.arange(H, dtype=jnp.float32) + 1.0) / H - 1.0
    xs = (2.0 * jnp.arange(W, dtype=jnp.float32) + 1.0) / W - 1.0
    xv = jnp.tile(xs, H)          # x varies fastest in row-major (h, w) flatten
    yv = jnp.repeat(ys, W)
    return jnp.stack([xv, yv], axis=0)                        # [2, HW] lane-dense


def _chip_params():
    """(num_tensorcores, vmem_capacity_bytes, per-step working-set target)."""
    kind = ""
    try:
        kind = jax.devices()[0].device_kind.lower()
    except Exception:
        pass
    if "v7" in kind:
        num_tc, vmem_cap, target = 2, 64 << 20, 6 << 20
    elif "v6" in kind:
        num_tc, vmem_cap, target = 1, 128 << 20, 6 << 20
    elif "v5" in kind and ("lite" in kind or "v5e" in kind):
        num_tc, vmem_cap, target = 1, 128 << 20, 2 << 20
    else:  # unknown / v4 / v5p: conservative VMEM, single forced step
        num_tc, vmem_cap, target = 1, 64 << 20, 4 << 20
    try:
        info = pltpu.get_tpu_info()
        vmem_cap = int(getattr(info, "vmem_capacity_bytes", vmem_cap))
    except Exception:
        pass
    return num_tc, vmem_cap, target


def _pick_batch_tile(B, C, L, HW, num_tc, target_bytes, max_unroll=16):
    """Largest divisor of B whose per-step working set fits ~target_bytes.

    Only forces >= num_tc grid steps (and prefers an even grid length) on
    multi-TensorCore chips; single-TC chips get one big block.
    """
    per_b = (C + L) * HW * 4
    cap = max(1, min(B, target_bytes // max(per_b, 1), max_unroll))
    if num_tc >= 2:
        cap = max(1, min(cap, B // num_tc))
    divisors = [d for d in range(1, cap + 1) if B % d == 0]
    if num_tc >= 2:
        even = [d for d in divisors if (B // d) % num_tc == 0]
        if even:
            return max(even)
    return max(divisors)


@functools.partial(jax.jit, static_argnames=("n_locations",))
def coord_regression_forward(x, hm_w, n_locations):
    """x: [B, C, H, W] float32 (NCHW). hm_w: [L, C] (1x1 conv weight, no bias).

    Returns (coords [B, L, 2], hm [B, L, H, W]) matching the PyTorch module.
    """
    B, C, H, W = x.shape
    L = n_locations
    HW = H * W

    x_flat = x.reshape(B, C, HW)
    cv = _normalized_coord_table(H, W)                        # [2, HW]

    num_tc, vmem_cap, target_bytes = _chip_params()
    Bt = _pick_batch_tile(B, C, L, HW, num_tc, target_bytes)
    grid = (B // Bt,)

    use_vpu = C <= 32
    if use_vpu:
        # lane-width-1 weight columns: w_arg[c] == hm_w[:, c, None]
        w_arg = jnp.transpose(hm_w)[:, :, None]               # [C, L, 1]
        w_spec = pl.BlockSpec((C, L, 1), lambda b: (0, 0, 0))
    else:
        w_arg = hm_w                                          # [L, C]
        w_spec = pl.BlockSpec((L, C), lambda b: (0, 0))

    # Explicit scoped-VMEM sizing: double-buffered (x + hm + coord) blocks plus
    # the resident weights / coord table and headroom, capped by the chip.
    per_step = Bt * (C + L) * HW * 4 + Bt * L * 2 * 4
    const_bytes = (2 * HW + 2 * L * C) * 4
    upper = min(int(0.72 * vmem_cap), 64 << 20)
    vmem_limit = int(min(max(2 * per_step + 2 * const_bytes + (2 << 20), 8 << 20),
                         upper))
    # TODO(synk): add a C-tiled reduction-axis accumulator path for very large
    #             backbone C*H*W where 2*per_step would exceed the VMEM cap.

    grid_spec = pltpu.PrefetchScalarGridSpec(
        num_scalar_prefetch=0,
        grid=grid,
        in_specs=[
            pl.BlockSpec((Bt, C, HW), lambda b: (b, 0, 0)),
            w_spec,
            pl.BlockSpec((2, HW), lambda b: (0, 0)),
        ],
        out_specs=[
            pl.BlockSpec((Bt, L, 1), lambda b: (b, 0, 0)),
            pl.BlockSpec((Bt, L, 1), lambda b: (b, 0, 0)),
            pl.BlockSpec((Bt, L, HW), lambda b: (b, 0, 0)),
        ],
    )

    cx, cy, hm_flat = pl.pallas_call(
        _make_kernel(Bt, C, use_vpu),
        grid_spec=grid_spec,
        out_shape=(
            jax.ShapeDtypeStruct((B, L, 1), jnp.float32),
            jax.ShapeDtypeStruct((B, L, 1), jnp.float32),
            jax.ShapeDtypeStruct((B, L, HW), jnp.float32),
        ),
        compiler_params=pltpu.CompilerParams(
            dimension_semantics=("parallel",),
            vmem_limit_bytes=vmem_limit,
        ),
    )(x_flat, w_arg, cv)

    coords = jnp.concatenate([cx, cy], axis=-1)               # [B, L, 2] (x, y)
    return coords, hm_flat.reshape(B, L, H, W)


def _reference(x, hm_w):
    B, C, H, W = x.shape
    L = hm_w.shape[0]
    xf = x.reshape(B, C, H * W)
    u = jnp.einsum("lc,bcp->blp", hm_w, xf)
    m = jnp.max(u, axis=-1, keepdims=True)
    p = jnp.exp(u - m)
    hm = p / jnp.sum(p, axis=-1, keepdims=True)
    cv = _normalized_coord_table(H, W)                        # [2, HW]
    coords = jnp.einsum("blp,kp->blk", hm, cv)
    return coords, hm.reshape(B, L, H, W)


if __name__ == "__main__":
    # Small, module-consistent shapes: batch=2, in_channel=4, 16x16 spatial,
    # n_locations=8 landmark heatmaps.
    B, C, H, W = 2, 4, 16, 16
    L = 8

    key = jax.random.PRNGKey(0)
    kx, kw = jax.random.split(key)
    x = jax.random.normal(kx, (B, C, H, W), dtype=jnp.float32)
    # Deterministic init of hm_conv weight [L, C] (kernel_size=1, bias=False),
    # roughly PyTorch's kaiming-uniform scale for fan_in=C.
    bound = 1.0 / jnp.sqrt(jnp.float32(C))
    hm_w = jax.random.uniform(kw, (L, C), dtype=jnp.float32,
                              minval=-bound, maxval=bound)

    coords, hm = coord_regression_forward(x, hm_w, n_locations=L)
    jax.block_until_ready((coords, hm))

    coords_ref, hm_ref = _reference(x, hm_w)
    assert coords.shape == (B, L, 2) and hm.shape == (B, L, H, W)
    assert jnp.allclose(hm, hm_ref, atol=2e-3, rtol=2e-3)
    assert jnp.allclose(coords, coords_ref, atol=2e-3, rtol=2e-3)

    print("KERNEL_OK")
</pallas_src>

<mosaic_0001>
module attributes {stable_mosaic.version = 11 : i64} {
  func.func @kernel(%arg0: i32, %arg1: memref<2x4x256xf32, #tpu.memory_space<vmem>>, %arg2: memref<4x8x1xf32, #tpu.memory_space<vmem>>, %arg3: memref<2x256xf32, #tpu.memory_space<vmem>>, %arg4: memref<2x8x1xf32, #tpu.memory_space<vmem>>, %arg5: memref<2x8x1xf32, #tpu.memory_space<vmem>>, %arg6: memref<2x8x256xf32, #tpu.memory_space<vmem>>) attributes {dimension_semantics = [#tpu.dimension_semantics<parallel>], iteration_bounds = array<i64: 1>, scalar_prefetch = 0 : i64, scratch_operands = 0 : i64, tpu.core_type = #tpu.core_type<tc>, window_params = [{transform_indices = @transform_0, window_bounds = array<i64: 2, 4, 256>}, {pipeline_mode = #tpu.pipeline_mode<synchronous>, transform_indices = @transform_1, window_bounds = array<i64: 4, 8, 1>}, {pipeline_mode = #tpu.pipeline_mode<synchronous>, transform_indices = @transform_2, window_bounds = array<i64: 2, 256>}, {transform_indices = @transform_3, window_bounds = array<i64: 2, 8, 1>}, {transform_indices = @transform_4, window_bounds = array<i64: 2, 8, 1>}, {transform_indices = @transform_5, window_bounds = array<i64: 2, 8, 256>}]} {
    %c0 = arith.constant 0 : index
    %c0_0 = arith.constant 0 : index
    %0 = vector.load %arg3[%c0, %c0_0] : memref<2x256xf32, #tpu.memory_space<vmem>>, vector<1x256xf32>
    %c1 = arith.constant 1 : index
    %c0_1 = arith.constant 0 : index
    %1 = vector.load %arg3[%c1, %c0_1] : memref<2x256xf32, #tpu.memory_space<vmem>>, vector<1x256xf32>
    %c0_2 = arith.constant 0 : index
    %c0_3 = arith.constant 0 : index
    %c0_4 = arith.constant 0 : index
    %2 = vector.load %arg2[%c0_2, %c0_3, %c0_4] : memref<4x8x1xf32, #tpu.memory_space<vmem>>, vector<1x8x1xf32>
    %3 = vector.shape_cast %2 : vector<1x8x1xf32> to vector<8x1xf32>
    %c0_5 = arith.constant 0 : index
    %c0_6 = arith.constant 0 : index
    %c0_7 = arith.constant 0 : index
    %4 = vector.load %arg1[%c0_5, %c0_6, %c0_7] : memref<2x4x256xf32, #tpu.memory_space<vmem>>, vector<1x1x256xf32>
    %5 = vector.shape_cast %4 : vector<1x1x256xf32> to vector<1x256xf32>
    %6 = vector.broadcast %3 : vector<8x1xf32> to vector<8x256xf32>
    %7 = vector.broadcast %5 : vector<1x256xf32> to vector<8x256xf32>
    %8 = arith.mulf %6, %7 : vector<8x256xf32>
    %c1_8 = arith.constant 1 : index
    %c0_9 = arith.constant 0 : index
    %c0_10 = arith.constant 0 : index
    %9 = vector.load %arg2[%c1_8, %c0_9, %c0_10] : memref<4x8x1xf32, #tpu.memory_space<vmem>>, vector<1x8x1xf32>
    %10 = vector.shape_cast %9 : vector<1x8x1xf32> to vector<8x1xf32>
    %c0_11 = arith.constant 0 : index
    %c1_12 = arith.constant 1 : index
    %c0_13 = arith.constant 0 : index
    %11 = vector.load %arg1[%c0_11, %c1_12, %c0_13] : memref<2x4x256xf32, #tpu.memory_space<vmem>>, vector<1x1x256xf32>
    %12 = vector.shape_cast %11 : vector<1x1x256xf32> to vector<1x256xf32>
    %13 = vector.broadcast %10 : vector<8x1xf32> to vector<8x256xf32>
    %14 = vector.broadcast %12 : vector<1x256xf32> to vector<8x256xf32>
    %15 = arith.mulf %13, %14 : vector<8x256xf32>
    %16 = arith.addf %8, %15 : vector<8x256xf32>
    %c2 = arith.constant 2 : index
    %c0_14 = arith.constant 0 : index
    %c0_15 = arith.constant 0 : index
    %17 = vector.load %arg2[%c2, %c0_14, %c0_15] : memref<4x8x1xf32, #tpu.memory_space<vmem>>, vector<1x8x1xf32>
    %18 = vector.shape_cast %17 : vector<1x8x1xf32> to vector<8x1xf32>
    %c0_16 = arith.constant 0 : index
    %c2_17 = arith.constant 2 : index
    %c0_18 = arith.constant 0 : index
    %19 = vector.load %arg1[%c0_16, %c2_17, %c0_18] : memref<2x4x256xf32, #tpu.memory_space<vmem>>, vector<1x1x256xf32>
    %20 = vector.shape_cast %19 : vector<1x1x256xf32> to vector<1x256xf32>
    %21 = vector.broadcast %18 : vector<8x1xf32> to vector<8x256xf32>
    %22 = vector.broadcast %20 : vector<1x256xf32> to vector<8x256xf32>
    %23 = arith.mulf %21, %22 : vector<8x256xf32>
    %24 = arith.addf %16, %23 : vector<8x256xf32>
    %c3 = arith.constant 3 : index
    %c0_19 = arith.constant 0 : index
    %c0_20 = arith.constant 0 : index
    %25 = vector.load %arg2[%c3, %c0_19, %c0_20] : memref<4x8x1xf32, #tpu.memory_space<vmem>>, vector<1x8x1xf32>
    %26 = vector.shape_cast %25 : vector<1x8x1xf32> to vector<8x1xf32>
    %c0_21 = arith.constant 0 : index
    %c3_22 = arith.constant 3 : index
    %c0_23 = arith.constant 0 : index
    %27 = vector.load %arg1[%c0_21, %c3_22, %c0_23] : memref<2x4x256xf32, #tpu.memory_space<vmem>>, vector<1x1x256xf32>
    %28 = vector.shape_cast %27 : vector<1x1x256xf32> to vector<1x256xf32>
    %29 = vector.broadcast %26 : vector<8x1xf32> to vector<8x256xf32>
    %30 = vector.broadcast %28 : vector<1x256xf32> to vector<8x256xf32>
    %31 = arith.mulf %29, %30 : vector<8x256xf32>
    %32 = arith.addf %24, %31 : vector<8x256xf32>
    %cst = arith.constant dense<0xFF800000> : vector<8xf32>
    %33 = vector.multi_reduction <maximumf>, %32, %cst [1] : vector<8x256xf32> to vector<8xf32>
    %34 = vector.shape_cast %33 : vector<8xf32> to vector<8x1xf32>
    %35 = vector.broadcast %34 : vector<8x1xf32> to vector<8x256xf32>
    %36 = arith.subf %32, %35 : vector<8x256xf32>
    %37 = math.exp %36 : vector<8x256xf32>
    %cst_24 = arith.constant dense<0.000000e+00> : vector<8xf32>
    %38 = vector.multi_reduction <add>, %37, %cst_24 [1] : vector<8x256xf32> to vector<8xf32>
    %39 = vector.shape_cast %38 : vector<8xf32> to vector<8x1xf32>
    %40 = tpu.reciprocal %39 : vector<8x1xf32> -> vector<8x1xf32>
    %41 = vector.broadcast %0 : vector<1x256xf32> to vector<8x256xf32>
    %42 = arith.mulf %37, %41 : vector<8x256xf32>
    %cst_25 = arith.constant dense<0.000000e+00> : vector<8xf32>
    %43 = vector.multi_reduction <add>, %42, %cst_25 [1] : vector<8x256xf32> to vector<8xf32>
    %44 = vector.shape_cast %43 : vector<8xf32> to vector<8x1xf32>
    %45 = vector.broadcast %1 : vector<1x256xf32> to vector<8x256xf32>
    %46 = arith.mulf %37, %45 : vector<8x256xf32>
    %cst_26 = arith.constant dense<0.000000e+00> : vector<8xf32>
    %47 = vector.multi_reduction <add>, %46, %cst_26 [1] : vector<8x256xf32> to vector<8xf32>
    %48 = vector.shape_cast %47 : vector<8xf32> to vector<8x1xf32>
    %49 = vector.broadcast %40 : vector<8x1xf32> to vector<8x256xf32>
    %50 = arith.mulf %37, %49 : vector<8x256xf32>
    %c0_27 = arith.constant 0 : index
    %c0_28 = arith.constant 0 : index
    %c0_29 = arith.constant 0 : index
    %51 = vector.load %arg6[%c0_27, %c0_28, %c0_29] : memref<2x8x256xf32, #tpu.memory_space<vmem>>, vector<1x8x256xf32>
    %52 = vector.shape_cast %51 : vector<1x8x256xf32> to vector<8x256xf32>
    %53 = vector.shape_cast %50 : vector<8x256xf32> to vector<1x8x256xf32>
    tpu.vector_store %arg6[%c0_27, %c0_28, %c0_29], %53 {strides = array<i32>} : memref<2x8x256xf32, #tpu.memory_space<vmem>>, vector<1x8x256xf32>,
    %54 = arith.mulf %44, %40 : vector<8x1xf32>
    %c0_30 = arith.constant 0 : index
    %c0_31 = arith.constant 0 : index
    %c0_32 = arith.constant 0 : index
    %55 = vector.load %arg4[%c0_30, %c0_31, %c0_32] : memref<2x8x1xf32, #tpu.memory_space<vmem>>, vector<1x8x1xf32>
    %56 = vector.shape_cast %55 : vector<1x8x1xf32> to vector<8x1xf32>
    %57 = vector.shape_cast %54 : vector<8x1xf32> to vector<1x8x1xf32>
    tpu.vector_store %arg4[%c0_30, %c0_31, %c0_32], %57 {strides = array<i32>} : memref<2x8x1xf32, #tpu.memory_space<vmem>>, vector<1x8x1xf32>,
    %58 = arith.mulf %48, %40 : vector<8x1xf32>
    %c0_33 = arith.constant 0 : index
    %c0_34 = arith.constant 0 : index
    %c0_35 = arith.constant 0 : index
    %59 = vector.load %arg5[%c0_33, %c0_34, %c0_35] : memref<2x8x1xf32, #tpu.memory_space<vmem>>, vector<1x8x1xf32>
    %60 = vector.shape_cast %59 : vector<1x8x1xf32> to vector<8x1xf32>
    %61 = vector.shape_cast %58 : vector<8x1xf32> to vector<1x8x1xf32>
    tpu.vector_store %arg5[%c0_33, %c0_34, %c0_35], %61 {strides = array<i32>} : memref<2x8x1xf32, #tpu.memory_space<vmem>>, vector<1x8x1xf32>,
    %c0_36 = arith.constant 0 : index
    %c0_37 = arith.constant 0 : index
    %c0_38 = arith.constant 0 : index
    %62 = vector.load %arg2[%c0_36, %c0_37, %c0_38] : memref<4x8x1xf32, #tpu.memory_space<vmem>>, vector<1x8x1xf32>
    %63 = vector.shape_cast %62 : vector<1x8x1xf32> to vector<8x1xf32>
    %c1_39 = arith.constant 1 : index
    %c0_40 = arith.constant 0 : index
    %c0_41 = arith.constant 0 : index
    %64 = vector.load %arg1[%c1_39, %c0_40, %c0_41] : memref<2x4x256xf32, #tpu.memory_space<vmem>>, vector<1x1x256xf32>
    %65 = vector.shape_cast %64 : vector<1x1x256xf32> to vector<1x256xf32>
    %66 = vector.broadcast %63 : vector<8x1xf32> to vector<8x256xf32>
    %67 = vector.broadcast %65 : vector<1x256xf32> to vector<8x256xf32>
    %68 = arith.mulf %66, %67 : vector<8x256xf32>
    %c1_42 = arith.constant 1 : index
    %c0_43 = arith.constant 0 : index
    %c0_44 = arith.constant 0 : index
    %69 = vector.load %arg2[%c1_42, %c0_43, %c0_44] : memref<4x8x1xf32, #tpu.memory_space<vmem>>, vector<1x8x1xf32>
    %70 = vector.shape_cast %69 : vector<1x8x1xf32> to vector<8x1xf32>
    %c1_45 = arith.constant 1 : index
    %c1_46 = arith.constant 1 : index
    %c0_47 = arith.constant 0 : index
    %71 = vector.load %arg1[%c1_45, %c1_46, %c0_47] : memref<2x4x256xf32, #tpu.memory_space<vmem>>, vector<1x1x256xf32>
    %72 = vector.shape_cast %71 : vector<1x1x256xf32> to vector<1x256xf32>
    %73 = vector.broadcast %70 : vector<8x1xf32> to vector<8x256xf32>
    %74 = vector.broadcast %72 : vector<1x256xf32> to vector<8x256xf32>
    %75 = arith.mulf %73, %74 : vector<8x256xf32>
    %76 = arith.addf %68, %75 : vector<8x256xf32>
    %c2_48 = arith.constant 2 : index
    %c0_49 = arith.constant 0 : index
    %c0_50 = arith.constant 0 : index
    %77 = vector.load %arg2[%c2_48, %c0_49, %c0_50] : memref<4x8x1xf32, #tpu.memory_space<vmem>>, vector<1x8x1xf32>
    %78 = vector.shape_cast %77 : vector<1x8x1xf32> to vector<8x1xf32>
    %c1_51 = arith.constant 1 : index
    %c2_52 = arith.constant 2 : index
    %c0_53 = arith.constant 0 : index
    %79 = vector.load %arg1[%c1_51, %c2_52, %c0_53] : memref<2x4x256xf32, #tpu.memory_space<vmem>>, vector<1x1x256xf32>
    %80 = vector.shape_cast %79 : vector<1x1x256xf32> to vector<1x256xf32>
    %81 = vector.broadcast %78 : vector<8x1xf32> to vector<8x256xf32>
    %82 = vector.broadcast %80 : vector<1x256xf32> to vector<8x256xf32>
    %83 = arith.mulf %81, %82 : vector<8x256xf32>
    %84 = arith.addf %76, %83 : vector<8x256xf32>
    %c3_54 = arith.constant 3 : index
    %c0_55 = arith.constant 0 : index
    %c0_56 = arith.constant 0 : index
    %85 = vector.load %arg2[%c3_54, %c0_55, %c0_56] : memref<4x8x1xf32, #tpu.memory_space<vmem>>, vector<1x8x1xf32>
    %86 = vector.shape_cast %85 : vector<1x8x1xf32> to vector<8x1xf32>
    %c1_57 = arith.constant 1 : index
    %c3_58 = arith.constant 3 : index
    %c0_59 = arith.constant 0 : index
    %87 = vector.load %arg1[%c1_57, %c3_58, %c0_59] : memref<2x4x256xf32, #tpu.memory_space<vmem>>, vector<1x1x256xf32>
    %88 = vector.shape_cast %87 : vector<1x1x256xf32> to vector<1x256xf32>
    %89 = vector.broadcast %86 : vector<8x1xf32> to vector<8x256xf32>
    %90 = vector.broadcast %88 : vector<1x256xf32> to vector<8x256xf32>
    %91 = arith.mulf %89, %90 : vector<8x256xf32>
    %92 = arith.addf %84, %91 : vector<8x256xf32>
    %cst_60 = arith.constant dense<0xFF800000> : vector<8xf32>
    %93 = vector.multi_reduction <maximumf>, %92, %cst_60 [1] : vector<8x256xf32> to vector<8xf32>
    %94 = vector.shape_cast %93 : vector<8xf32> to vector<8x1xf32>
    %95 = vector.broadcast %94 : vector<8x1xf32> to vector<8x256xf32>
    %96 = arith.subf %92, %95 : vector<8x256xf32>
    %97 = math.exp %96 : vector<8x256xf32>
    %cst_61 = arith.constant dense<0.000000e+00> : vector<8xf32>
    %98 = vector.multi_reduction <add>, %97, %cst_61 [1] : vector<8x256xf32> to vector<8xf32>
    %99 = vector.shape_cast %98 : vector<8xf32> to vector<8x1xf32>
    %100 = tpu.reciprocal %99 : vector<8x1xf32> -> vector<8x1xf32>
    %101 = vector.broadcast %0 : vector<1x256xf32> to vector<8x256xf32>
    %102 = arith.mulf %97, %101 : vector<8x256xf32>
    %cst_62 = arith.constant dense<0.000000e+00> : vector<8xf32>
    %103 = vector.multi_reduction <add>, %102, %cst_62 [1] : vector<8x256xf32> to vector<8xf32>
    %104 = vector.shape_cast %103 : vector<8xf32> to vector<8x1xf32>
    %105 = vector.broadcast %1 : vector<1x256xf32> to vector<8x256xf32>
    %106 = arith.mulf %97, %105 : vector<8x256xf32>
    %cst_63 = arith.constant dense<0.000000e+00> : vector<8xf32>
    %107 = vector.multi_reduction <add>, %106, %cst_63 [1] : vector<8x256xf32> to vector<8xf32>
    %108 = vector.shape_cast %107 : vector<8xf32> to vector<8x1xf32>
    %109 = vector.broadcast %100 : vector<8x1xf32> to vector<8x256xf32>
    %110 = arith.mulf %97, %109 : vector<8x256xf32>
    %c1_64 = arith.constant 1 : index
    %c0_65 = arith.constant 0 : index
    %c0_66 = arith.constant 0 : index
    %111 = vector.load %arg6[%c1_64, %c0_65, %c0_66] : memref<2x8x256xf32, #tpu.memory_space<vmem>>, vector<1x8x256xf32>
    %112 = vector.shape_cast %111 : vector<1x8x256xf32> to vector<8x256xf32>
    %113 = vector.shape_cast %110 : vector<8x256xf32> to vector<1x8x256xf32>
    tpu.vector_store %arg6[%c1_64, %c0_65, %c0_66], %113 {strides = array<i32>} : memref<2x8x256xf32, #tpu.memory_space<vmem>>, vector<1x8x256xf32>,
    %114 = arith.mulf %104, %100 : vector<8x1xf32>
    %c1_67 = arith.constant 1 : index
    %c0_68 = arith.constant 0 : index
    %c0_69 = arith.constant 0 : index
    %115 = vector.load %arg4[%c1_67, %c0_68, %c0_69] : memref<2x8x1xf32, #tpu.memory_space<vmem>>, vector<1x8x1xf32>
    %116 = vector.shape_cast %115 : vector<1x8x1xf32> to vector<8x1xf32>
    %117 = vector.shape_cast %114 : vector<8x1xf32> to vector<1x8x1xf32>
    tpu.vector_store %arg4[%c1_67, %c0_68, %c0_69], %117 {strides = array<i32>} : memref<2x8x1xf32, #tpu.memory_space<vmem>>, vector<1x8x1xf32>,
    %118 = arith.mulf %108, %100 : vector<8x1xf32>
    %c1_70 = arith.constant 1 : index
    %c0_71 = arith.constant 0 : index
    %c0_72 = arith.constant 0 : index
    %119 = vector.load %arg5[%c1_70, %c0_71, %c0_72] : memref<2x8x1xf32, #tpu.memory_space<vmem>>, vector<1x8x1xf32>
    %120 = vector.shape_cast %119 : vector<1x8x1xf32> to vector<8x1xf32>
    %121 = vector.shape_cast %118 : vector<8x1xf32> to vector<1x8x1xf32>
    tpu.vector_store %arg5[%c1_70, %c0_71, %c0_72], %121 {strides = array<i32>} : memref<2x8x1xf32, #tpu.memory_space<vmem>>, vector<1x8x1xf32>,
    return
  }
  func.func @transform_0(%arg0: i32) -> (i32, i32, i32) {
    %c0_i32 = arith.constant 0 : i32
    %c0_i32_0 = arith.constant 0 : i32
    %c0_i32_1 = arith.constant 0 : i32
    return %arg0, %c0_i32, %c0_i32_0 : i32, i32, i32
  }
  func.func @transform_1(%arg0: i32) -> (i32, i32, i32) {
    %c0_i32 = arith.constant 0 : i32
    %c0_i32_0 = arith.constant 0 : i32
    %c0_i32_1 = arith.constant 0 : i32
    %c0_i32_2 = arith.constant 0 : i32
    return %c0_i32, %c0_i32_0, %c0_i32_1 : i32, i32, i32
  }
  func.func @transform_2(%arg0: i32) -> (i32, i32) {
    %c0_i32 = arith.constant 0 : i32
    %c0_i32_0 = arith.constant 0 : i32
    %c0_i32_1 = arith.constant 0 : i32
    return %c0_i32, %c0_i32_0 : i32, i32
  }
  func.func @transform_3(%arg0: i32) -> (i32, i32, i32) {
    %c0_i32 = arith.constant 0 : i32
    %c0_i32_0 = arith.constant 0 : i32
    %c0_i32_1 = arith.constant 0 : i32
    return %arg0, %c0_i32, %c0_i32_0 : i32, i32, i32
  }
  func.func @transform_4(%arg0: i32) -> (i32, i32, i32) {
    %c0_i32 = arith.constant 0 : i32
    %c0_i32_0 = arith.constant 0 : i32
    %c0_i32_1 = arith.constant 0 : i32
    return %arg0, %c0_i32, %c0_i32_0 : i32, i32, i32
  }
  func.func @transform_5(%arg0: i32) -> (i32, i32, i32) {
    %c0_i32 = arith.constant 0 : i32
    %c0_i32_0 = arith.constant 0 : i32
    %c0_i32_1 = arith.constant 0 : i32
    return %arg0, %c0_i32, %c0_i32_0 : i32, i32, i32
  }
}

</mosaic_0001>

<bundles_post_ra>
// kernel: tile.8
= control target key start
LH: loop header
LB: loop body
LE: loop exit
PB: predicated region body
PF: predicated region fallthrough
CT: control target
= control target key end

     0   :  { %s28_s0 = inlined_call_operand.vmem [shape: f32[16], index: 0, kind: input, shape index: {}]   ;;  %s29_s1 = inlined_call_operand.vmem [shape: f32[16,16], index: 1, kind: output, shape index: {}]  }
   0x1   :  { %v4_v0 = vld [vmem:[%s28_s0] ss:$0 sm:$0xff] }
   0x2   :  { %5 = vst [vmem:[%s29_s1] sm:$0xff] %v4_v0  ;;  %8 = vst [vmem:[%s29_s1 + $0x8] sm:$0xff] %v4_v0 }

// kernel: coord_regression_forward.1
= control target key start
LH: loop header
LB: loop body
LE: loop exit
PB: predicated region body
PF: predicated region fallthrough
CT: control target
= control target key end

     0   :  { %v338_v0 = vmov 0   ;;  %v28_v5 = vlaneseq  ;;  %vm162_vm0 = vcmask 7168   ;;  %s463_s1 = inlined_call_operand.vmem [shape: f32[4,8,1], index: 1, kind: input, shape index: {}]   ;;  %s464_s0 = inlined_call_operand.vmem [shape: f32[2,4,256], index: 0, kind: input, shape index: {}]   ;;  %s465_s2 = inlined_call_operand.vmem [shape: f32[2,256], index: 2, kind: input, shape index: {}]   ;;  %s466_s5 = inlined_call_operand.vmem [shape: f32[2,8,256], index: 5, kind: output, shape index: {2}]   ;;  %s467_s3 = inlined_call_operand.vmem [shape: f32[2,8,1], index: 3, kind: output, shape index: {0}]   ;;  %s468_s4 = inlined_call_operand.vmem [shape: f32[2,8,1], index: 4, kind: output, shape index: {1}]  }
   0x1   :  { %325 = vset.pattern.permute.xlu1 %v338_v0  ;;  %324 = vset.pattern.permute.xlu0 %v338_v0  ;;  %v166_v1 = vld [vmem:[%s463_s1] sm:$0xff]  ;;  %v313_v2 = vld [vmem:[%s463_s1 + $0x8] sm:$0xff]  ;;  %v315_v3 = vld [vmem:[%s463_s1 + $0x10] sm:$0xff] }
   0x2   :  { %171 = vperm.xlu1 %325, %v166_v1   ;;  %24 = vperm.xlu0 %324, %v166_v1   ;;  %v317_v4 = vld [vmem:[%s463_s1 + $0x18] sm:$0xff]  ;;  %v29_v6 = vshrl.u32 %v28_v5, 7  ;;  %v312_v7 = vld [vmem:[%s464_s0 + $0x8] ss:$4 sm:$0x3] }
   0x3   :  { %v314_v8 = vld [vmem:[%s464_s0 + $0x9] ss:$4 sm:$0x3]  ;;  %v307_v11 = vld [vmem:[%s464_s0 + $0x1] ss:$4 sm:$0x3] }
   0x4   :  { %v387_v9 = vsub.s32 0, %v29_v6  ;;  %v389_v10 = vsub.s32 1, %v29_v6  ;;  %v21_v16 = vld [vmem:[%s464_s0] ss:$4 sm:$0x3] }
   0x5   :  { %v316_v17 = vld [vmem:[%s464_s0 + $0xa] ss:$4 sm:$0x3]  ;;  %v309_v22 = vld [vmem:[%s464_s0 + $0x2] ss:$4 sm:$0x3] }
   0x6   :  { %192 = vperm.xlu1 %325, %v313_v2   ;;  %46 = vperm.xlu0 %324, %v313_v2   ;;  %v178_v14 = vrot.slane %v312_v7, %v387_v9  ;;  %v182_v15 = vrot.slane %v312_v7, %v389_v10  ;;  %v199_v18 = vrot.slane %v314_v8, %v387_v9  ;;  %v318_v29 = vld [vmem:[%s464_s0 + $0xb] ss:$4 sm:$0x3]  ;;  %v311_v34 = vld [vmem:[%s464_s0 + $0x3] ss:$4 sm:$0x3] }
   0x7   :  { %v203_v19 = vrot.slane %v314_v8, %v389_v10  ;;  %v53_v20 = vrot.slane %v307_v11, %v387_v9  ;;  %v57_v21 = vrot.slane %v307_v11, %v389_v10  ;;  %v31_v23 = vrot.slane %v21_v16, %v387_v9 }
   0x8   :  { %v35_v24 = vrot.slane %v21_v16, %v389_v10  ;;  %v222_v27 = vrot.slane %v316_v17, %v387_v9  ;;  %v226_v28 = vrot.slane %v316_v17, %v389_v10  ;;  %v77_v32 = vrot.slane %v309_v22, %v387_v9 }
   0x9   :  { %v81_v33 = vrot.slane %v309_v22, %v389_v10  ;;  %v245_v39 = vrot.slane %v318_v29, %v387_v9  ;;  %v249_v40 = vrot.slane %v318_v29, %v389_v10  ;;  %v101_v45 = vrot.slane %v311_v34, %v387_v9 }
   0xa   :  { %215 = vperm.xlu1 %325, %v315_v3   ;;  %70 = vperm.xlu0 %324, %v315_v3   ;;  %v105_v46 = vrot.slane %v311_v34, %v389_v10 }
   0xe   :  { %238 = vperm.xlu1 %325, %v317_v4   ;;  %94 = vperm.xlu0 %324, %v317_v4  }
  0x7d   :  { %v172_v12 = vpop.permute.xlu1 %171  ;;  %v25_v13 = vpop.permute.xlu0 %24 }
  0x7e   :  { %v185_v30 = vmul.f32 %v178_v14, %v172_v12  ;;  %v186_v31 = vmul.f32 %v182_v15, %v172_v12  ;;  %v38_v41 = vmul.f32 %v31_v23, %v25_v13  ;;  %v39_v42 = vmul.f32 %v35_v24, %v25_v13  ;;  %v305_v24 = vld [vmem:[%s465_s2 + $0x1] ss:$2 sm:$0x3] }
  0x81   :  { %v193_v25 = vpop.permute.xlu1 %192  ;;  %v47_v26 = vpop.permute.xlu0 %46 }
  0x82   :  { %v206_v35 = vmul.f32 %v199_v18, %v193_v25  ;;  %v207_v36 = vmul.f32 %v203_v19, %v193_v25  ;;  %v60_v37 = vmul.f32 %v53_v20, %v47_v26  ;;  %v61_v38 = vmul.f32 %v57_v21, %v47_v26  ;;  %v17_v19 = vld [vmem:[%s465_s2] ss:$2 sm:$0x3] }
  0x83   :  { %v129_v20 = vrot.slane %v17_v19, %v387_v9  ;;  %v133_v22 = vrot.slane %v17_v19, %v389_v10 }
  0x84   :  { %v208_v51 = vadd.f32 %v206_v35, %v185_v30  ;;  %v209_v52 = vadd.f32 %v207_v36, %v186_v31  ;;  %v62_v53 = vadd.f32 %v60_v37, %v38_v41  ;;  %v63_v54 = vadd.f32 %v61_v38, %v39_v42 }
  0x85   :  { %v216_v43 = vpop.permute.xlu1 %215  ;;  %v71_v44 = vpop.permute.xlu0 %70  ;;  %v145_v30 = vrot.slane %v305_v24, %v387_v9  ;;  %v149_v31 = vrot.slane %v305_v24, %v389_v10 }
  0x86   :  { %v229_v47 = vmul.f32 %v222_v27, %v216_v43  ;;  %v230_v48 = vmul.f32 %v226_v28, %v216_v43  ;;  %v84_v49 = vmul.f32 %v77_v32, %v71_v44  ;;  %v85_v50 = vmul.f32 %v81_v33, %v71_v44 }
  0x88   :  { %v231_v55 = vadd.f32 %v229_v47, %v208_v51  ;;  %v232_v56 = vadd.f32 %v230_v48, %v209_v52  ;;  %v86_v57 = vadd.f32 %v84_v49, %v62_v53  ;;  %v87_v58 = vadd.f32 %v85_v50, %v63_v54 }
  0x89   :  { %v239_v59 = vpop.permute.xlu1 %238  ;;  %v95_v60 = vpop.permute.xlu0 %94 }
  0x8a   :  { %v252_v61 = vmul.f32 %v245_v39, %v239_v59  ;;  %v253_v62 = vmul.f32 %v249_v40, %v239_v59  ;;  %v108_v63 = vmul.f32 %v101_v45, %v95_v60  ;;  %v109_v0 = vmul.f32 %v105_v46, %v95_v60 }
  0x8c   :  { %v254_v1 = vadd.f32 %v252_v61, %v231_v55  ;;  %v255_v2 = vadd.f32 %v253_v62, %v232_v56  ;;  %v110_v3 = vadd.f32 %v108_v63, %v86_v57  ;;  %v111_v4 = vadd.f32 %v109_v0, %v87_v58 }
  0x8e   :  { %v256_v5 = vmax.f32 %v254_v1, %v255_v2  ;;  %v112_v6 = vmax.f32 %v110_v3, %v111_v4 }
  0x90   :  { %257 = vmax.xlane.f32.xlu1 %v256_v5  ;;  %113 = vmax.xlane.f32.xlu0 %v112_v6 }
 0x119   :  { %v258_v7 = vpop.xlane.xlu1 %257  ;;  %v114_v8 = vpop.xlane.xlu0 %113 }
 0x11a   :  { %v259_v11 = vsub.f32 %v254_v1, %v258_v7  ;;  %v260_v12 = vsub.f32 %v255_v2, %v258_v7  ;;  %v115_v13 = vsub.f32 %v110_v3, %v114_v8  ;;  %v116_v14 = vsub.f32 %v111_v4, %v114_v8 }
 0x11c   :  { %v261_v15 = vmul.f32 1.442695, %v259_v11  ;;  %v263_v16 = vmul.f32 1.442695, %v260_v12  ;;  %v117_v17 = vmul.f32 1.442695, %v115_v13 }
 0x11d   :  { %v119_v18 = vmul.f32 1.442695, %v116_v14 }
 0x11e   :  { %326 = vpow2.f32 %v261_v15 }
 0x11f   :  { %328 = vpow2.f32 %v263_v16 }
 0x120   :  { %330 = vpow2.f32 %v117_v17 }
 0x121   :  { %332 = vpow2.f32 %v119_v18 }
 0x12b   :  { %v327_v21 = vpop.eup %326 }
 0x12c   :  { %v329_v23 = vpop.eup %328  ;;  %v269_v33 = vmul.f32 %v327_v21, %v129_v20  ;;  %v274_v40 = vmul.f32 %v327_v21, %v145_v30 }
 0x12d   :  { %v331_v25 = vpop.eup %330  ;;  %v270_v34 = vmul.f32 %v329_v23, %v133_v22  ;;  %v265_v35 = vadd.f32 %v329_v23, %v327_v21  ;;  %v275_v41 = vmul.f32 %v329_v23, %v149_v31 }
 0x12e   :  { %v333_v26 = vpop.eup %332  ;;  %v136_v27 = vmul.f32 %v331_v25, %v129_v20  ;;  %v152_v36 = vmul.f32 %v331_v25, %v145_v30 }
 0x12f   :  { %v121_v28 = vadd.f32 %v333_v26, %v331_v25  ;;  %v137_v29 = vmul.f32 %v333_v26, %v133_v22  ;;  %v153_v37 = vmul.f32 %v333_v26, %v149_v31  ;;  %v271_v38 = vadd.f32 %v270_v34, %v269_v33 }
 0x130   :  { %v276_v42 = vadd.f32 %v275_v41, %v274_v40 }
 0x131   :  { %122 = vadd.xlane.f32.xlu0 %v121_v28  ;;  %v138_v32 = vadd.f32 %v137_v29, %v136_v27  ;;  %v154_v39 = vadd.f32 %v153_v37, %v152_v36 }
 0x133   :  { %139 = vadd.xlane.f32.xlu1 %v138_v32 }
 0x135   :  { %266 = vadd.xlane.f32.xlu0 %v265_v35 }
 0x137   :  { %272 = vadd.xlane.f32.xlu1 %v271_v38 }
 0x139   :  { %155 = vadd.xlane.f32.xlu0 %v154_v39 }
 0x13d   :  { %277 = vadd.xlane.f32.xlu0 %v276_v42 }
 0x1ba   :  { %v123_v9 = vpop.xlane.xlu0 %122 }
 0x1bb   :  { %334 = vrcp.f32 %v123_v9 }
 0x1bc   :  { %v140_v43 = vpop.xlane.xlu1 %139 }
 0x1be   :  { %v267_v10 = vpop.xlane.xlu0 %266 }
 0x1bf   :  { %336 = vrcp.f32 %v267_v10 }
 0x1c0   :  { %v273_v51 = vpop.xlane.xlu1 %272 }
 0x1c2   :  { %v156_v44 = vpop.xlane.xlu0 %155 }
 0x1c6   :  { %v278_v52 = vpop.xlane.xlu0 %277 }
 0x1c8   :  { %v335_v45 = vpop.eup %334 }
 0x1c9   :  { %v157_v46 = vmul.f32 %v335_v45, %v331_v25  ;;  %v158_v47 = vmul.f32 %v335_v45, %v333_v26  ;;  %v161_v48 = vmul.f32 %v335_v45, %v140_v43  ;;  %v164_v49 = vmul.f32 %v335_v45, %v156_v44 }
 0x1cb   :  { %159 = vst [vmem:[%s466_s5] sm:$0xff] %v157_v46  ;;  %160 = vst [vmem:[%s466_s5 + $0x8] sm:$0xff] %v158_v47 }
 0x1cc   :  { %163 = vst.msk [vmem:[%s467_s3] sm:$0xff] %vm162_vm0, %v161_v48  ;;  %165 = vst.msk [vmem:[%s468_s4] sm:$0xff] %vm162_vm0, %v164_v49  ;;  %v337_v50 = vpop.eup %336 }
 0x1cd   :  { %v279_v53 = vmul.f32 %v337_v50, %v327_v21  ;;  %v280_v54 = vmul.f32 %v337_v50, %v329_v23  ;;  %v284_v55 = vmul.f32 %v337_v50, %v273_v51  ;;  %v287_v56 = vmul.f32 %v337_v50, %v278_v52 }
 0x1cf   :  { %319 = vst [vmem:[%s466_s5 + $0x10] sm:$0xff] %v279_v53  ;;  %320 = vst [vmem:[%s466_s5 + $0x18] sm:$0xff] %v280_v54 }
 0x1d0   :  { %321 = vst.msk [vmem:[%s467_s3 + $0x8] sm:$0xff] %vm162_vm0, %v284_v55  ;;  %322 = vst.msk [vmem:[%s468_s4 + $0x8] sm:$0xff] %vm162_vm0, %v287_v56 }

</bundles_post_ra>
